<compile_context>
chip_gen: v5e
topology: v5e:2x2
jax: 0.10.0
libtpu: 0.0.40
codegen_flags: <defaults>
</compile_context>

<pallas_src>
import jax
import jax.numpy as jnp
from jax.experimental import pallas as pl
from jax.experimental.pallas import tpu as pltpu


_TARGET_TILE_BYTES = 6 * 1024 * 1024  # ~4-8 MiB / input tile / grid step


def _round_up(x, m):
    return ((x + m - 1) // m) * m


def _vmem_params():
    """Returns (tile byte budget, scoped vmem limit) — generation aware."""
    cap = 64 << 20  # conservative default (v7x per-TC VMEM)
    try:
        cap = int(pltpu.get_tpu_info().vmem_capacity_bytes)
    except Exception:
        pass
    if cap >= (96 << 20):          # v5e / v6e: 128 MiB physical VMEM
        return 48 << 20, 80 << 20
    return 24 << 20, 44 << 20      # v7x: 64 MiB physical VMEM


def cross_interaction_kernel(x0_ref, xi_ref, w_ref, b_ref, o_ref):
    # s[b, 0] = sum_d X_i[b, d] * w[d]   (f32 accumulation)
    # VPU multiply + XLU lane reduce; both units are otherwise idle in this
    # HBM-bandwidth-bound kernel.
    s = jnp.sum(xi_ref[...].astype(jnp.float32) * w_ref[...],
                axis=-1, keepdims=True)                       # [tile, 1] f32
    if o_ref.dtype == jnp.float32:
        o_ref[...] = s * x0_ref[...] + b_ref[...]
    else:
        # bf16 activations: scale+bias stage in native dtype to halve the
        # vreg/VMEM pressure of the second stage (dot accumulation stays f32).
        o_ref[...] = (s.astype(o_ref.dtype) * x0_ref[...]
                      + b_ref[...].astype(o_ref.dtype))


def cross_interaction(x0, xi, weight, bias, *, batch_tile=None,
                      vmem_limit_bytes=None):
    """out[b, d] = (sum_k xi[b, k] * w[k]) * x0[b, d] + bias[d].

    x0, xi: [B, D]; weight: [D], [D, 1] or [1, D]; bias: [D].
    """
    B, D = x0.shape
    assert xi.shape == (B, D), (xi.shape, x0.shape)
    dtype = x0.dtype
    itemsize = jnp.dtype(dtype).itemsize
    sublane = 16 if dtype == jnp.bfloat16 else 8

    # Parameters stay in f32 (tiny [1, D] rows) for bit-closeness to the
    # PyTorch f32 module regardless of activation dtype.
    w_row = jnp.asarray(weight).reshape(1, D).astype(jnp.float32)
    b_row = jnp.asarray(bias).reshape(1, D).astype(jnp.float32)

    budget, base_limit = _vmem_params()
    if vmem_limit_bytes is not None:
        base_limit = int(vmem_limit_bytes)

    # --- batch tile selection -------------------------------------------
    # x0 + xi + out tiles, each double-buffered by the BlockSpec pipeline.
    per_row_bytes = 3 * 2 * D * itemsize
    if batch_tile is None:
        fit_rows = budget // per_row_bytes
        rows_for_bw = _TARGET_TILE_BYTES // max(1, D * itemsize)
        bt = max(sublane, min(fit_rows, rows_for_bw))
        bt = (bt // sublane) * sublane
        if bt >= B and B > sublane:
            # Keep >= 2 grid steps when B allows so the "parallel" batch axis
            # shards across both v7x TensorCores and pipelining engages.
            bt = _round_up(pl.cdiv(B, 2), sublane)
        batch_tile = bt
    batch_tile = max(sublane, (int(batch_tile) // sublane) * sublane)
    batch_tile = min(batch_tile, _round_up(B, sublane))

    # Make sure the scoped VMEM limit covers the double-buffered footprint.
    footprint = 2 * 3 * batch_tile * D * itemsize + 2 * 2 * D * 4
    vmem_limit = max(base_limit, footprint + (4 << 20))
    # TODO(synk): add a D-chunked two-pass fallback if even an 8-row tile
    # exceeds physical VMEM (needs D > ~1M f32 columns; bumping the scoped
    # limit covers every realistic shape).

    # Ragged batch: grid clips the last block; OOB rows are never written.
    grid = (pl.cdiv(B, batch_tile),)

    cost = pl.CostEstimate(
        flops=4 * B * D,
        transcendentals=0,
        bytes_accessed=3 * B * D * itemsize + 2 * D * 4,
    )

    return pl.pallas_call(
        cross_interaction_kernel,
        out_shape=jax.ShapeDtypeStruct((B, D), dtype),
        grid_spec=pltpu.PrefetchScalarGridSpec(
            num_scalar_prefetch=0,
            grid=grid,
            in_specs=[
                pl.BlockSpec((batch_tile, D), lambda i: (i, 0)),  # X_0
                pl.BlockSpec((batch_tile, D), lambda i: (i, 0)),  # X_i
                pl.BlockSpec((1, D), lambda i: (0, 0)),           # weight (f32)
                pl.BlockSpec((1, D), lambda i: (0, 0)),           # bias   (f32)
            ],
            out_specs=pl.BlockSpec((batch_tile, D), lambda i: (i, 0)),
        ),
        compiler_params=pltpu.CompilerParams(
            dimension_semantics=("parallel",),
            vmem_limit_bytes=int(vmem_limit),
        ),
        cost_estimate=cost,
    )(x0, xi, w_row, b_row)


if __name__ == "__main__":
    key = jax.random.PRNGKey(0)
    k_x0, k_xi, k_w, k_x0b, k_xib, k_wb = jax.random.split(key, 6)

    # --- aligned f32 case (matches the module's typical use) -------------
    batch, input_dim = 8, 32
    x0 = jax.random.normal(k_x0, (batch, input_dim), dtype=jnp.float32)
    xi = jax.random.normal(k_xi, (batch, input_dim), dtype=jnp.float32)

    # nn.Linear(input_dim, 1, bias=False).weight is (1, input_dim); stored as
    # an (input_dim, 1) column for the reference. bias = zeros(input_dim) as
    # in the module's __init__.
    bound = 1.0 / (input_dim ** 0.5)
    weight = jax.random.uniform(
        k_w, (input_dim, 1), dtype=jnp.float32, minval=-bound, maxval=bound
    )
    bias = jnp.zeros((input_dim,), dtype=jnp.float32)

    out = jax.block_until_ready(cross_interaction(x0, xi, weight, bias))
    ref = (xi @ weight) * x0 + bias[None, :]
    assert out.shape == ref.shape
    assert jnp.allclose(out, ref, atol=1e-5, rtol=1e-5), "mismatch vs reference"

    # --- ragged / non-aligned case (exercises the clipped last block) ----
    b2, d2 = 10, 40
    x0b = jax.random.normal(k_x0b, (b2, d2), dtype=jnp.float32)
    xib = jax.random.normal(k_xib, (b2, d2), dtype=jnp.float32)
    wb = jax.random.normal(k_wb, (d2, 1), dtype=jnp.float32) * 0.1
    bb = jnp.linspace(-1.0, 1.0, d2, dtype=jnp.float32)
    out2 = jax.block_until_ready(cross_interaction(x0b, xib, wb, bb))
    ref2 = (xib @ wb) * x0b + bb[None, :]
    assert jnp.allclose(out2, ref2, atol=1e-5, rtol=1e-5), "mismatch (ragged)"

    # --- bf16 activations (exercises native bf16 scale+bias stage) -------
    x0h = x0.astype(jnp.bfloat16)
    xih = xi.astype(jnp.bfloat16)
    out3 = jax.block_until_ready(cross_interaction(x0h, xih, weight, bias))
    ref3 = (xih.astype(jnp.float32) @ weight) * x0h.astype(jnp.float32) + bias
    assert out3.dtype == jnp.bfloat16
    assert jnp.allclose(out3.astype(jnp.float32), ref3, atol=0.25, rtol=0.05), \
        "mismatch (bf16)"

    print("KERNEL_OK")
</pallas_src>

<mosaic_0001>
module attributes {stable_mosaic.version = 11 : i64} {
  func.func @cross_interaction_kernel(%arg0: i32, %arg1: memref<8x32xf32, #tpu.memory_space<vmem>>, %arg2: memref<8x32xf32, #tpu.memory_space<vmem>>, %arg3: memref<1x32xf32, #tpu.memory_space<vmem>>, %arg4: memref<1x32xf32, #tpu.memory_space<vmem>>, %arg5: memref<8x32xf32, #tpu.memory_space<vmem>>) attributes {dimension_semantics = [#tpu.dimension_semantics<parallel>], iteration_bounds = array<i64: 1>, scalar_prefetch = 0 : i64, scratch_operands = 0 : i64, tpu.core_type = #tpu.core_type<tc>, window_params = [{transform_indices = @transform_0, window_bounds = array<i64: 8, 32>}, {transform_indices = @transform_1, window_bounds = array<i64: 8, 32>}, {pipeline_mode = #tpu.pipeline_mode<synchronous>, transform_indices = @transform_2, window_bounds = array<i64: 1, 32>}, {pipeline_mode = #tpu.pipeline_mode<synchronous>, transform_indices = @transform_3, window_bounds = array<i64: 1, 32>}, {transform_indices = @transform_4, window_bounds = array<i64: 8, 32>}]} {
    %c0 = arith.constant 0 : index
    %c0_0 = arith.constant 0 : index
    %0 = vector.load %arg2[%c0, %c0_0] : memref<8x32xf32, #tpu.memory_space<vmem>>, vector<8x32xf32>
    %c0_1 = arith.constant 0 : index
    %c0_2 = arith.constant 0 : index
    %1 = vector.load %arg3[%c0_1, %c0_2] : memref<1x32xf32, #tpu.memory_space<vmem>>, vector<1x32xf32>
    %2 = vector.broadcast %1 : vector<1x32xf32> to vector<8x32xf32>
    %3 = arith.mulf %0, %2 : vector<8x32xf32>
    %cst = arith.constant dense<0.000000e+00> : vector<8xf32>
    %4 = vector.multi_reduction <add>, %3, %cst [1] : vector<8x32xf32> to vector<8xf32>
    %5 = vector.shape_cast %4 : vector<8xf32> to vector<8x1xf32>
    %c0_3 = arith.constant 0 : index
    %c0_4 = arith.constant 0 : index
    %6 = vector.load %arg1[%c0_3, %c0_4] : memref<8x32xf32, #tpu.memory_space<vmem>>, vector<8x32xf32>
    %7 = vector.broadcast %5 : vector<8x1xf32> to vector<8x32xf32>
    %8 = arith.mulf %7, %6 : vector<8x32xf32>
    %c0_5 = arith.constant 0 : index
    %c0_6 = arith.constant 0 : index
    %9 = vector.load %arg4[%c0_5, %c0_6] : memref<1x32xf32, #tpu.memory_space<vmem>>, vector<1x32xf32>
    %10 = vector.broadcast %9 : vector<1x32xf32> to vector<8x32xf32>
    %11 = arith.addf %8, %10 : vector<8x32xf32>
    %c0_7 = arith.constant 0 : index
    %c0_8 = arith.constant 0 : index
    %12 = vector.load %arg5[%c0_7, %c0_8] : memref<8x32xf32, #tpu.memory_space<vmem>>, vector<8x32xf32>
    tpu.vector_store %arg5[%c0_7, %c0_8], %11 {strides = array<i32>} : memref<8x32xf32, #tpu.memory_space<vmem>>, vector<8x32xf32>,
    return
  }
  func.func @transform_0(%arg0: i32) -> (i32, i32) {
    %c0_i32 = arith.constant 0 : i32
    %c0_i32_0 = arith.constant 0 : i32
    return %arg0, %c0_i32 : i32, i32
  }
  func.func @transform_1(%arg0: i32) -> (i32, i32) {
    %c0_i32 = arith.constant 0 : i32
    %c0_i32_0 = arith.constant 0 : i32
    return %arg0, %c0_i32 : i32, i32
  }
  func.func @transform_2(%arg0: i32) -> (i32, i32) {
    %c0_i32 = arith.constant 0 : i32
    %c0_i32_0 = arith.constant 0 : i32
    %c0_i32_1 = arith.constant 0 : i32
    return %c0_i32, %c0_i32_0 : i32, i32
  }
  func.func @transform_3(%arg0: i32) -> (i32, i32) {
    %c0_i32 = arith.constant 0 : i32
    %c0_i32_0 = arith.constant 0 : i32
    %c0_i32_1 = arith.constant 0 : i32
    return %c0_i32, %c0_i32_0 : i32, i32
  }
  func.func @transform_4(%arg0: i32) -> (i32, i32) {
    %c0_i32 = arith.constant 0 : i32
    %c0_i32_0 = arith.constant 0 : i32
    return %arg0, %c0_i32 : i32, i32
  }
}

</mosaic_0001>

<bundles_post_ra>
// kernel: tpu_custom_call.1
= control target key start
LH: loop header
LB: loop body
LE: loop exit
PB: predicated region body
PF: predicated region fallthrough
CT: control target
= control target key end

     0   :  { %9 = vsyncpa [#allocation3], 0  ;;  %s208_s0 = inlined_call_operand.hbm [shape: f32[8,32], index: 0, kind: input, shape index: {}]   ;;  %s209_s1 = inlined_call_operand.hbm [shape: f32[8,32], index: 1, kind: input, shape index: {}]   ;;  %s210_s2 = inlined_call_operand.vmem [shape: f32[1,32], index: 2, kind: input, shape index: {}]   ;;  %s211_s3 = inlined_call_operand.vmem [shape: f32[1,32], index: 3, kind: input, shape index: {}]   ;;  %s212_s4 = inlined_call_operand.hbm [shape: f32[8,32], index: 4, kind: output, shape index: {}]  }
   0x1   :  { %10 = vsyncpa [#allocation6], 0 }
   0x2   :  { %11 = vsyncpa [#allocation4], 0  ;;  %s17_s17 = sshll.u32 %s208_s0, 4  ;;  %s165_s18 = smov [#allocation2]   ;;  %s18_s17 = int_to_ptr.hbm [resolvable:$true] %s17_s17 }
   0x3   :  { %s19_s19 = sshll.u32 %s165_s18, 4  ;;  %s28_s22 = sshll.u32 %s209_s1, 4  ;;  %s20_s19 = int_to_ptr.vmem [resolvable:$true] %s19_s19  ;;  %s29_s22 = int_to_ptr.hbm [resolvable:$true] %s28_s22 }
   0x4   :  { %22 = dma.hbm_to_vmem [thread:$0]  %s18_s17, 128, %s20_s19, [#allocation3]  }
   0x5   :  { %s166_s23 = smov [#allocation5]  }
   0x6   :  { %s30_s24 = sshll.u32 %s166_s23, 4  ;;  %s31_s24 = int_to_ptr.vmem [resolvable:$true] %s30_s24 }
   0x7   :  { %33 = dma.hbm_to_vmem [thread:$0]  %s29_s22, 128, %s31_s24, [#allocation6]  }
   0x8   :  { %159 = dma.done.wait [#allocation3], 128  }
   0x9   :  { %160 = vsyncadd [#allocation3], 4294967168 }
   0xa   :  { %161 = dma.done.wait [#allocation6], 128  }
   0xb   :  { %162 = vsyncadd [#allocation6], 4294967168  ;;  %v46_v0 = vld [vmem:[#allocation5] sm:$0xff]  ;;  %v85_v1 = vld [vmem:[%s210_s2] ss:$0 sm:$0xff]  ;;  %vm52_vm0 = vcmask 261120  }
   0xc   :  { %v51_v2 = vmul.f32 %v85_v1, %v46_v0  ;;  %v56_v4 = vld [vmem:[#allocation2] sm:$0xff]  ;;  %s167_s27 = smov [#allocation7]   ;;  %s71_s5 = sshll.u32 %s212_s4, 4  ;;  %s72_s5 = int_to_ptr.hbm [resolvable:$true] %s71_s5 }
   0xd   :  { %v86_v5 = vld [vmem:[%s211_s3] ss:$0 sm:$0xff]  ;;  %s69_s28 = sshll.u32 %s167_s27, 4  ;;  %s70_s28 = int_to_ptr.vmem [resolvable:$true] %s69_s28 }
   0xe   :  { %v53_v3 = vsel %vm52_vm0, %v51_v2, 0.0 }
   0xf   :  { %54 = vadd.xlane.f32.xlu0 %v53_v3 }
  0x82   :  { %v55_v6 = vpop.xlane.xlu0 %54 }
  0x83   :  { %v57_v7 = vmul.f32 %v56_v4, %v55_v6 }
  0x85   :  { %v62_v8 = vadd.f32 %v86_v5, %v57_v7 }
  0x87   :  { %63 = vst.msk [vmem:[#allocation7] sm:$0xff] %vm52_vm0, %v62_v8 }
  0x88   :  { %74 = dma.vmem_to_hbm [thread:$0]  %s70_s28, 128, %s72_s5, [#allocation4]  }
  0x89   :  { %163 = dma.done.wait [#allocation4], 128  }
  0x8a   :  { %164 = vsyncadd [#allocation4], 4294967168 }
  0x8b   :  { %79 = vsyncpa [#allocation3], 1 }
  0x8c   :  { %80 = vsyncpa [#allocation6], 1 }
  0x8d   :  { %81 = vsyncpa [#allocation4], 1 }

</bundles_post_ra>
